<compile_context>
chip_gen: v7x
topology: tpu7x:2x2x1
jax: 0.10.0
libtpu: 0.0.40
codegen_flags: <defaults>
</compile_context>

<pallas_src>
import jax
import jax.numpy as jnp
from jax.experimental import pallas as pl
from jax.experimental.pallas import tpu as pltpu


def _ltau_kernel(x_ref, we_ref, be_ref, tau_ref, wd_ref, bd_ref, o_ref):
    # tmp = e(x) = x @ We^T + be      : (B, M) @ (M, T) -> (B, T)   (MXU, bf16 in / f32 acc)
    x_bf = x_ref[...].astype(jnp.bfloat16)
    tmp = jnp.dot(x_bf, we_ref[...], preferred_element_type=jnp.float32)
    tmp = tmp + be_ref[...]                    # f32 bias add (VPU)
    # tmp = tmp * tau                 : elementwise (B, T) in f32   (VPU)
    tmp = tmp * tau_ref[...]
    # res = d(tmp) = tmp @ Wd^T + bd  : (B, T) @ (T, M) -> (B, M)   (MXU, bf16 in / f32 acc)
    out = jnp.dot(tmp.astype(jnp.bfloat16), wd_ref[...],
                  preferred_element_type=jnp.float32)
    o_ref[...] = (out + bd_ref[...]).astype(o_ref.dtype)


# Rows per grid step in the large-batch path (multiple of 8 sublanes; with
# double-buffered f32 x/tau/out tiles this stays far inside every generation's
# scoped-VMEM default, including v5e's 16 MiB).
_LARGE_B_TILE = 512


def _ltau_small(x, tau, we_t, be, wd_t, bd):
    B, M = x.shape
    vmem = pltpu.MemorySpace.VMEM
    # No grid: the whole problem fits in VMEM; a 1-step grid adds only
    # pipeline prologue/epilogue overhead for zero overlap benefit.
    return pl.pallas_call(
        _ltau_kernel,
        out_shape=jax.ShapeDtypeStruct((B, M), x.dtype),
        in_specs=[pl.BlockSpec(memory_space=vmem)] * 6,
        out_specs=pl.BlockSpec(memory_space=vmem),
    )(x, we_t, be, tau, wd_t, bd)


def _ltau_tiled(x, tau, we_t, be, wd_t, bd, tb):
    B, M = x.shape
    T = tau.shape[1]
    return pl.pallas_call(
        _ltau_kernel,
        out_shape=jax.ShapeDtypeStruct((B, M), x.dtype),
        grid=(B // tb,),
        in_specs=[
            pl.BlockSpec((tb, M), lambda i: (i, 0)),   # x      : per-step tile
            pl.BlockSpec((M, T), lambda i: (0, 0)),    # We^T   : VMEM-resident
            pl.BlockSpec((1, T), lambda i: (0, 0)),    # be     : VMEM-resident
            pl.BlockSpec((tb, T), lambda i: (i, 0)),   # tau    : per-step tile
            pl.BlockSpec((T, M), lambda i: (0, 0)),    # Wd^T   : VMEM-resident
            pl.BlockSpec((1, M), lambda i: (0, 0)),    # bd     : VMEM-resident
        ],
        out_specs=pl.BlockSpec((tb, M), lambda i: (i, 0)),  # lane-dense stores
        compiler_params=pltpu.CompilerParams(
            dimension_semantics=("parallel",)),  # shards B across v7x's 2 TCs
    )(x, we_t, be, tau, wd_t, bd)


@jax.jit
def _ltau_forward(x, tau, we_t, be, wd_t, bd):
    B = x.shape[0]
    # Shapes are static under jit, so this Python branch is resolved at trace
    # time: small batches take the grid-less fused call; large, tile-divisible
    # batches take the B-tiled pipelined path.
    if B >= 2 * _LARGE_B_TILE and B % _LARGE_B_TILE == 0:
        return _ltau_tiled(x, tau, we_t, be, wd_t, bd, _LARGE_B_TILE)
    return _ltau_small(x, tau, we_t, be, wd_t, bd)


class LtauNoAdd:
    """JAX/Pallas equivalent of the PyTorch LtauNoAdd module."""

    def __init__(self, middle_size, tau_size):
        self.middle_size = middle_size
        self.tau_size = tau_size
        self.we_t = None  # (middle, tau)  == e.weight.T, bf16 (MXU-native)
        self.be = None    # (1, tau)       == e.bias, f32
        self.wd_t = None  # (tau, middle)  == d.weight.T, bf16 (MXU-native)
        self.bd = None    # (1, middle)    == d.bias, f32

    def build_model(self, key):
        # nn.Linear default init: U(-1/sqrt(fan_in), 1/sqrt(fan_in)).
        k1, k2, k3, k4 = jax.random.split(key, 4)
        m, t = self.middle_size, self.tau_size
        lim_e = 1.0 / (m ** 0.5)
        lim_d = 1.0 / (t ** 0.5)
        # Stored in kernel-ready layout: (in, out) weights in bf16 (halves the
        # dominant weight DMA, native MXU dtype), (1, out) f32 biases, so
        # forward() does no per-call reshapes/transposes/casts.
        self.we_t = jax.random.uniform(
            k1, (m, t), jnp.float32, -lim_e, lim_e).astype(jnp.bfloat16)
        self.be = jax.random.uniform(k2, (1, t), jnp.float32, -lim_e, lim_e)
        self.wd_t = jax.random.uniform(
            k3, (t, m), jnp.float32, -lim_d, lim_d).astype(jnp.bfloat16)
        self.bd = jax.random.uniform(k4, (1, m), jnp.float32, -lim_d, lim_d)

    def forward(self, x, tau):
        return _ltau_forward(x, tau, self.we_t, self.be, self.wd_t, self.bd)

    __call__ = forward


def _reference(layer, x, tau):
    # Plain-JAX reference using the same stored (bf16) weight values upcast to
    # f32 and HIGHEST-precision matmuls; documents the accepted bf16-class
    # accuracy of the kernel's MXU passes.
    we = layer.we_t.astype(jnp.float32)
    wd = layer.wd_t.astype(jnp.float32)
    tmp = jnp.dot(x, we, precision=jax.lax.Precision.HIGHEST) + layer.be
    tmp = tmp * tau
    return jnp.dot(tmp, wd, precision=jax.lax.Precision.HIGHEST) + layer.bd


if __name__ == "__main__":
    key = jax.random.PRNGKey(0)
    k_model, k_x, k_tau, k_x2, k_tau2 = jax.random.split(key, 5)

    # Hardware-aligned shapes: B multiple of 8 (sublanes), feature dims
    # multiples of 128 (lanes) -> unmasked, full-vreg stores.
    B = 8
    MIDDLE = 128
    TAU = 128

    layer = LtauNoAdd(MIDDLE, TAU)
    layer.build_model(k_model)

    # --- small-batch (grid-less, fused) path ---
    x = jax.random.normal(k_x, (B, MIDDLE), dtype=jnp.float32)
    tau = jax.random.normal(k_tau, (B, TAU), dtype=jnp.float32)
    out = jax.block_until_ready(layer(x, tau))
    ref = _reference(layer, x, tau)
    assert out.shape == (B, MIDDLE)
    assert jnp.allclose(out, ref, rtol=2e-2, atol=2e-2), float(
        jnp.max(jnp.abs(out - ref)))

    # --- large-batch (B-tiled, weight-resident) path ---
    B2 = 1024
    x2 = jax.random.normal(k_x2, (B2, MIDDLE), dtype=jnp.float32)
    tau2 = jax.random.normal(k_tau2, (B2, TAU), dtype=jnp.float32)
    out2 = jax.block_until_ready(layer(x2, tau2))
    ref2 = _reference(layer, x2, tau2)
    assert out2.shape == (B2, MIDDLE)
    assert jnp.allclose(out2, ref2, rtol=2e-2, atol=2e-2), float(
        jnp.max(jnp.abs(out2 - ref2)))

    print("KERNEL_OK")
</pallas_src>

<mosaic_0001>
module attributes {stable_mosaic.version = 11 : i64} {
  func.func @_ltau_kernel(%arg0: memref<8x128xf32, #tpu.memory_space<vmem>>, %arg1: memref<128x128xbf16, #tpu.memory_space<vmem>>, %arg2: memref<1x128xf32, #tpu.memory_space<vmem>>, %arg3: memref<8x128xf32, #tpu.memory_space<vmem>>, %arg4: memref<128x128xbf16, #tpu.memory_space<vmem>>, %arg5: memref<1x128xf32, #tpu.memory_space<vmem>>, %arg6: memref<8x128xf32, #tpu.memory_space<vmem>>) attributes {dimension_semantics = [], scalar_prefetch = 0 : i64, scratch_operands = 0 : i64, tpu.core_type = #tpu.core_type<tc>} {
    %c0 = arith.constant 0 : index
    %c0_0 = arith.constant 0 : index
    %0 = vector.load %arg0[%c0, %c0_0] : memref<8x128xf32, #tpu.memory_space<vmem>>, vector<8x128xf32>
    %1 = arith.truncf %0 : vector<8x128xf32> to vector<8x128xbf16>
    %c0_1 = arith.constant 0 : index
    %c0_2 = arith.constant 0 : index
    %2 = vector.load %arg1[%c0_1, %c0_2] : memref<128x128xbf16, #tpu.memory_space<vmem>>, vector<128x128xbf16>
    %cst = arith.constant dense<0.000000e+00> : vector<8x128xf32>
    %3 = tpu.matmul %1, %2, %cst {dimension_numbers = #tpu.dot_dimension_numbers<[1], [0], [0], [1], [0, 0, 1, 1], [], []>} : vector<8x128xbf16>, vector<128x128xbf16>, vector<8x128xf32> -> vector<8x128xf32>
    %c0_3 = arith.constant 0 : index
    %c0_4 = arith.constant 0 : index
    %4 = vector.load %arg2[%c0_3, %c0_4] : memref<1x128xf32, #tpu.memory_space<vmem>>, vector<1x128xf32>
    %5 = vector.broadcast %4 : vector<1x128xf32> to vector<8x128xf32>
    %6 = arith.addf %3, %5 : vector<8x128xf32>
    %c0_5 = arith.constant 0 : index
    %c0_6 = arith.constant 0 : index
    %7 = vector.load %arg3[%c0_5, %c0_6] : memref<8x128xf32, #tpu.memory_space<vmem>>, vector<8x128xf32>
    %8 = arith.mulf %6, %7 : vector<8x128xf32>
    %9 = arith.truncf %8 : vector<8x128xf32> to vector<8x128xbf16>
    %c0_7 = arith.constant 0 : index
    %c0_8 = arith.constant 0 : index
    %10 = vector.load %arg4[%c0_7, %c0_8] : memref<128x128xbf16, #tpu.memory_space<vmem>>, vector<128x128xbf16>
    %cst_9 = arith.constant dense<0.000000e+00> : vector<8x128xf32>
    %11 = tpu.matmul %9, %10, %cst_9 {dimension_numbers = #tpu.dot_dimension_numbers<[1], [0], [0], [1], [0, 0, 1, 1], [], []>} : vector<8x128xbf16>, vector<128x128xbf16>, vector<8x128xf32> -> vector<8x128xf32>
    %c0_10 = arith.constant 0 : index
    %c0_11 = arith.constant 0 : index
    %12 = vector.load %arg5[%c0_10, %c0_11] : memref<1x128xf32, #tpu.memory_space<vmem>>, vector<1x128xf32>
    %13 = vector.broadcast %12 : vector<1x128xf32> to vector<8x128xf32>
    %14 = arith.addf %11, %13 : vector<8x128xf32>
    %c0_12 = arith.constant 0 : index
    %c0_13 = arith.constant 0 : index
    %15 = vector.load %arg6[%c0_12, %c0_13] : memref<8x128xf32, #tpu.memory_space<vmem>>, vector<8x128xf32>
    tpu.vector_store %arg6[%c0_12, %c0_13], %14 {strides = array<i32>} : memref<8x128xf32, #tpu.memory_space<vmem>>, vector<8x128xf32>,
    return
  }
}

</mosaic_0001>

<bundles_post_ra>
// kernel: _ltau_forward.1
= control target key start
LH: loop header
LB: loop body
LE: loop exit
PB: predicated region body
PF: predicated region fallthrough
CT: control target
= control target key end

     0   :  { %11 = vsyncpa [#allocation3], 0  ;;  %s656_s0 = inlined_call_operand.hbm [shape: f32[8,128], index: 0, kind: input, shape index: {}]   ;;  %s657_s1 = inlined_call_operand.hbm [shape: bf16[128,128], index: 1, kind: input, shape index: {}]   ;;  %s658_s2 = inlined_call_operand.vmem [shape: f32[1,128], index: 2, kind: input, shape index: {}]   ;;  %s659_s3 = inlined_call_operand.hbm [shape: f32[8,128], index: 3, kind: input, shape index: {}]   ;;  %s660_s4 = inlined_call_operand.hbm [shape: bf16[128,128], index: 4, kind: input, shape index: {}]   ;;  %s661_s5 = inlined_call_operand.vmem [shape: f32[1,128], index: 5, kind: input, shape index: {}]   ;;  %s662_s6 = inlined_call_operand.hbm [shape: f32[8,128], index: 6, kind: output, shape index: {}]  }
   0x1   :  { %12 = vsyncpa [#allocation6], 0 }
   0x2   :  { %13 = vsyncpa [#allocation9], 0 }
   0x3   :  { %14 = vsyncpa [#allocation4], 0  ;;  %s540_s21 = smov [#allocation5]   ;;  %s422_s25 = scalar_lea.hbm %s657_s1, 1024 }
   0x4   :  { %s30_s22 = sshll.u32 %s540_s21, 4  ;;  %p423_p0 = scmp.ne.s32.totalorder %s657_s1, %s422_s25  ;;  %s31_s22 = int_to_ptr.vmem [resolvable:$true] %s30_s22 }
   0x5   :  { %p426_p1 = scmp.lt.u32.totalorder %s422_s25, %s657_s1 }
   0x7   :  { %p428_p2 = pnand %p426_p1, %p423_p0 }
   0x9   :  { %431 = shalt.err (!%p428_p2)
}
   0xa   :  { %s432_s30 = scalar_lea.vmem %s31_s22, 1024  ;;  %p437_p4 = scmp.lt.s32.totalorder %s31_s22, %s31_s22 }
   0xb   :  { %p433_p3 = scmp.ne.s32.totalorder %s31_s22, %s432_s30  ;;  %p438_p5 = scmp.lt.s32.totalorder %s432_s30, %s432_s30 }
   0xd   :  { %p439_p6 = por %p438_p5, %p437_p4 }
   0xf   :  { %p440_p7 = pnand %p439_p6, %p433_p3 }
  0x11   :  { %443 = shalt.err (!%p440_p7)
}
  0x12   :  { %s541_s7 = smov 64   ;;  %s542_s8 = smov 4  }
  0x13   :  { %36 = dma.hbm_to_vmem [thread:$0]  %s657_s1, 1024, %s31_s22, [#allocation6], %s541_s7, %s541_s7, %s542_s8  }
  0x14   :  { %s543_s11 = smov [#allocation2]   ;;  %s544_s13 = smov [#allocation7]  }
  0x15   :  { %s21_s12 = sshll.u32 %s543_s11, 4  ;;  %s45_s14 = sshll.u32 %s544_s13, 4  ;;  %s22_s12 = int_to_ptr.vmem [resolvable:$true] %s21_s12  ;;  %s46_s14 = int_to_ptr.vmem [resolvable:$true] %s45_s14 }
  0x16   :  { %s444_s17 = scalar_lea.hbm %s656_s0, 128 }
  0x17   :  { %p445_p8 = scmp.ne.s32.totalorder %s656_s0, %s444_s17  ;;  %p448_p9 = scmp.lt.u32.totalorder %s444_s17, %s656_s0 }
  0x19   :  { %p450_p10 = pnand %p448_p9, %p445_p8 }
  0x1b   :  { %453 = shalt.err (!%p450_p10)
}
  0x1c   :  { %s454_s1 = scalar_lea.vmem %s22_s12, 128  ;;  %p459_p12 = scmp.lt.s32.totalorder %s22_s12, %s22_s12 }
  0x1d   :  { %p455_p11 = scmp.ne.s32.totalorder %s22_s12, %s454_s1  ;;  %p460_p13 = scmp.lt.s32.totalorder %s454_s1, %s454_s1 }
  0x1f   :  { %p461_p0 = por %p460_p13, %p459_p12 }
  0x21   :  { %p462_p1 = pnand %p461_p0, %p455_p11 }
  0x23   :  { %465 = shalt.err (!%p462_p1)
}
  0x24   :  { %24 = dma.hbm_to_vmem [thread:$0]  %s656_s0, 128, %s22_s12, [#allocation3]  }
  0x25   :  { %s466_s26 = scalar_lea.hbm %s659_s3, 128 }
  0x26   :  { %p467_p2 = scmp.ne.s32.totalorder %s659_s3, %s466_s26  ;;  %p470_p3 = scmp.lt.u32.totalorder %s466_s26, %s659_s3 }
  0x28   :  { %p472_p4 = pnand %p470_p3, %p467_p2 }
  0x2a   :  { %475 = shalt.err (!%p472_p4)
}
  0x2b   :  { %s476_s9 = scalar_lea.vmem %s46_s14, 128  ;;  %p481_p6 = scmp.lt.s32.totalorder %s46_s14, %s46_s14 }
  0x2c   :  { %p477_p5 = scmp.ne.s32.totalorder %s46_s14, %s476_s9  ;;  %p482_p7 = scmp.lt.s32.totalorder %s476_s9, %s476_s9 }
  0x2e   :  { %p483_p8 = por %p482_p7, %p481_p6 }
  0x30   :  { %p484_p9 = pnand %p483_p8, %p477_p5 }
  0x32   :  { %487 = shalt.err (!%p484_p9)
}
  0x33   :  { %48 = dma.hbm_to_vmem [thread:$0]  %s659_s3, 128, %s46_s14, [#allocation6]  }
  0x34   :  { %s545_s11 = smov [#allocation8]   ;;  %s488_s16 = scalar_lea.hbm %s660_s4, 1024 }
  0x35   :  { %s54_s12 = sshll.u32 %s545_s11, 4  ;;  %p489_p10 = scmp.ne.s32.totalorder %s660_s4, %s488_s16  ;;  %s55_s12 = int_to_ptr.vmem [resolvable:$true] %s54_s12 }
  0x36   :  { %p492_p11 = scmp.lt.u32.totalorder %s488_s16, %s660_s4 }
  0x38   :  { %p494_p12 = pnand %p492_p11, %p489_p10 }
  0x3a   :  { %497 = shalt.err (!%p494_p12)
}
  0x3b   :  { %s498_s21 = scalar_lea.vmem %s55_s12, 1024  ;;  %p503_p0 = scmp.lt.s32.totalorder %s55_s12, %s55_s12 }
  0x3c   :  { %p499_p13 = scmp.ne.s32.totalorder %s55_s12, %s498_s21  ;;  %p504_p1 = scmp.lt.s32.totalorder %s498_s21, %s498_s21 }
  0x3e   :  { %p505_p2 = por %p504_p1, %p503_p0 }
  0x40   :  { %p506_p3 = pnand %p505_p2, %p499_p13 }
  0x42   :  { %509 = shalt.err (!%p506_p3)
}
  0x43   :  { %60 = dma.hbm_to_vmem [thread:$0]  %s660_s4, 1024, %s55_s12, [#allocation9], %s541_s7, %s541_s7, %s542_s8  }
  0x44   :  { %532 = dma.done.wait [#allocation3], 128  }
  0x45   :  { %533 = vsyncadd [#allocation3], 4294967168 }
  0x46   :  { %534 = dma.done.wait [#allocation6], 1152  }
  0x47   :  { %535 = vsyncadd [#allocation6], 4294966144 }
  0x48   :  { %536 = dma.done.wait [#allocation9], 1024  }
  0x49   :  { %537 = vsyncadd [#allocation9], 4294966272  ;;  %v546_v0 = vmov 0.0   ;;  %vm547_vm0 = vmmov 0   ;;  %v406_v1 = vld [vmem:[#allocation5] sm:$0xff]   ;;  %v407_v2 = vld [vmem:[#allocation5 + $0x8] sm:$0xff]  }
  0x4a   :  { %357 = vmatprep.subr.bf16.mxu0 %v546_v0  ;;  %373 = vmatprep.mubr.msk.bf16.mxu0 %vm547_vm0, %v546_v0  ;;  %v408_v3 = vld [vmem:[#allocation5 + $0x10] sm:$0xff]   ;;  %v414_v4 = vld [vmem:[#allocation8] sm:$0xff]   ;;  %v409_v5 = vld [vmem:[#allocation5 + $0x18] sm:$0xff]   ;;  %s548_s22 = smov [#allocation10]  }
  0x4b   :  { %377 = vmatprep.subr.bf16.mxu1 %v546_v0  ;;  %393 = vmatprep.mubr.msk.bf16.mxu1 %vm547_vm0, %v546_v0  ;;  %v415_v6 = vld [vmem:[#allocation8 + $0x8] sm:$0xff]   ;;  %v410_v7 = vld [vmem:[#allocation5 + $0x20] sm:$0xff]   ;;  %v416_v8 = vld [vmem:[#allocation8 + $0x10] sm:$0xff]   ;;  %s310_s23 = sshll.u32 %s548_s22, 4  ;;  %s311_s23 = int_to_ptr.vmem [resolvable:$true] %s310_s23 }
  0x4c   :  { %358 = vmatpush3.bf16.msra.mxu0 %v406_v1  ;;  %378 = vmatpush3.bf16.msra.mxu1 %v414_v4  ;;  %v411_v9 = vld [vmem:[#allocation5 + $0x28] sm:$0xff]   ;;  %v417_v10 = vld [vmem:[#allocation8 + $0x18] sm:$0xff]   ;;  %v412_v11 = vld [vmem:[#allocation5 + $0x30] sm:$0xff]   ;;  %p515_p5 = scmp.lt.s32.totalorder %s311_s23, %s311_s23 }
  0x4d   :  { %359 = vmatprep.subr.bf16.mxu0 %v546_v0  ;;  %379 = vmatprep.subr.bf16.mxu1 %v546_v0  ;;  %v418_v12 = vld [vmem:[#allocation8 + $0x20] sm:$0xff]   ;;  %v413_v13 = vld [vmem:[#allocation5 + $0x38] sm:$0xff]   ;;  %v419_v15 = vld [vmem:[#allocation8 + $0x28] sm:$0xff]  }
  0x4e   :  { %v76_v14 = vld [vmem:[#allocation2] sm:$0xff]  ;;  %v421_v18 = vld [vmem:[#allocation8 + $0x38] sm:$0xff]  }
  0x4f   :  { %v77_v16 = vpack.c.bf16 %v76_v14, %v76_v14  ;;  %v420_v17 = vld [vmem:[#allocation8 + $0x30] sm:$0xff]   ;;  %v189_v21 = vld [vmem:[#allocation7] sm:$0xff] }
  0x50   :  { %360 = vmatpush3.bf16.msra.mxu0 %v407_v2  ;;  %380 = vmatpush3.bf16.msra.mxu1 %v415_v6  ;;  %v321_v19 = vld [vmem:[%s658_s2] ss:$0 sm:$0xff]  ;;  %s510_s2 = scalar_lea.vmem %s311_s23, 128 }
  0x51   :  { %361 = vmatprep.subr.bf16.mxu0 %v546_v0  ;;  %381 = vmatprep.subr.bf16.mxu1 %v546_v0  ;;  %v330_v28 = vld [vmem:[%s661_s5] ss:$0 sm:$0xff]  ;;  %p511_p4 = scmp.ne.s32.totalorder %s311_s23, %s510_s2  ;;  %p516_p6 = scmp.lt.s32.totalorder %s510_s2, %s510_s2 }
  0x53   :  { %p517_p7 = por %p516_p6, %p515_p5 }
  0x54   :  { %362 = vmatpush3.bf16.msra.mxu0 %v408_v3  ;;  %382 = vmatpush3.bf16.msra.mxu1 %v416_v8 }
  0x55   :  { %363 = vmatprep.subr.bf16.mxu0 %v546_v0  ;;  %383 = vmatprep.subr.bf16.mxu1 %v546_v0  ;;  %p518_p8 = pnand %p517_p7, %p511_p4 }
  0x58   :  { %364 = vmatpush3.bf16.msra.mxu0 %v409_v5  ;;  %384 = vmatpush3.bf16.msra.mxu1 %v417_v10 }
  0x59   :  { %365 = vmatprep.subr.bf16.mxu0 %v546_v0  ;;  %385 = vmatprep.subr.bf16.mxu1 %v546_v0 }
  0x5c   :  { %366 = vmatpush3.bf16.msra.mxu0 %v410_v7  ;;  %386 = vmatpush3.bf16.msra.mxu1 %v418_v12 }
  0x5d   :  { %367 = vmatprep.subr.bf16.mxu0 %v546_v0  ;;  %387 = vmatprep.subr.bf16.mxu1 %v546_v0 }
  0x60   :  { %368 = vmatpush3.bf16.msra.mxu0 %v411_v9  ;;  %388 = vmatpush3.bf16.msra.mxu1 %v419_v15 }
  0x61   :  { %369 = vmatprep.subr.bf16.mxu0 %v546_v0  ;;  %389 = vmatprep.subr.bf16.mxu1 %v546_v0 }
  0x64   :  { %370 = vmatpush3.bf16.msra.mxu0 %v412_v11  ;;  %390 = vmatpush3.bf16.msra.mxu1 %v420_v17 }
  0x65   :  { %371 = vmatprep.subr.bf16.mxu0 %v546_v0  ;;  %391 = vmatprep.subr.bf16.mxu1 %v546_v0 }
  0x68   :  { %372 = vmatpush3.bf16.msra.mxu0 %v413_v13  ;;  %392 = vmatpush3.bf16.msra.mxu1 %v421_v18 }
  0x6b   :  { %374 = vmatmul.mubr.bf16.vlgmr.msra.gmra.mrb[0].mxu0 %v77_v16 }
 0x13e   :  { %v183_v20 = vpop.f32.mrb[0].mxu0 }
 0x13f   :  { %v184_v22 = vadd.f32 %v321_v19, %v183_v20  ;;  %v375_v23 = vpop.f32.mrb[1].mxu0 }
 0x140   :  { %v186_v24 = vpop.f32.mrb[2].mxu0 }
 0x141   :  { %v190_v25 = vmul.f32 %v189_v21, %v184_v22  ;;  %v376_v26 = vpop.f32.mrb[3].mxu0 }
 0x143   :  { %v191_v27 = vpack.c.bf16 %v190_v25, %v190_v25 }
 0x145   :  { %394 = vmatmul.mubr.bf16.vlgmr.msra.gmra.mrb[0].mxu1 %v191_v27 }
 0x218   :  { %v297_v29 = vpop.f32.mrb[0].mxu1 }
 0x219   :  { %v298_v30 = vadd.f32 %v330_v28, %v297_v29  ;;  %v395_v31 = vpop.f32.mrb[1].mxu1 }
 0x21a   :  { %v300_v32 = vpop.f32.mrb[2].mxu1 }
 0x21b   :  { %303 = vst [vmem:[#allocation10] sm:$0xff] %v298_v30  ;;  %v396_v33 = vpop.f32.mrb[3].mxu1 }
 0x21c   :  { %521 = shalt.err (!%p518_p8)
}
 0x21d   :  { %s522_s5 = scalar_lea.hbm %s662_s6, 128 }
 0x21e   :  { %p523_p9 = scmp.ne.s32.totalorder %s662_s6, %s522_s5  ;;  %p526_p10 = scmp.lt.u32.totalorder %s522_s5, %s662_s6 }
 0x220   :  { %p528_p11 = pnand %p526_p10, %p523_p9 }
 0x222   :  { %531 = shalt.err (!%p528_p11)
}
 0x223   :  { %313 = dma.vmem_to_hbm [thread:$0]  %s311_s23, 128, %s662_s6, [#allocation4]  }
 0x224   :  { %538 = dma.done.wait [#allocation4], 128  }
 0x225   :  { %539 = vsyncadd [#allocation4], 4294967168 }
 0x226   :  { %317 = vsyncpa [#allocation3], 1 }
 0x227   :  { %318 = vsyncpa [#allocation6], 1 }
 0x228   :  { %319 = vsyncpa [#allocation9], 1 }
 0x229   :  { %320 = vsyncpa [#allocation4], 1 }

</bundles_post_ra>
